<compile_context>
chip_gen: v7x
topology: tpu7x:2x2x1
jax: 0.10.0
libtpu: 0.0.40
codegen_flags: <defaults>
</compile_context>

<pallas_src>
import functools

import jax
import jax.numpy as jnp
from jax.experimental import pallas as pl
from jax.experimental.pallas import tpu as pltpu


def _lightsaatt_kernel(x_ref, w1_ref, b1_ref, w2_ref, b2_ref, alpha_ref,
                       out_ref, *, height, width):
    # x_ref     : (1, CB, HW) f32  CB = G*C sublane rows (batch fold), HW lanes
    # w1_ref    : (CB, 9)     f32  depthwise conv1 weights, col = 3*kh + kw
    # b1_ref    : (CB, 1)     f32
    # w2_ref    : (CB, 9)     f32  depthwise conv2 weights
    # b2_ref    : (CB, 1)     f32
    # alpha_ref : (1, 1)      f32  PReLU slope (SMEM scalar)
    # out_ref   : (1, CB, HW) f32
    x = x_ref[0]                                     # (CB, HW)
    cb, hw = x.shape

    # Flat spatial coordinate of every lane; each sublane row is one
    # independent (sample, channel) image in row-major order.
    lane = jax.lax.broadcasted_iota(jnp.int32, (cb, hw), 1)
    if width & (width - 1) == 0:                     # power-of-two fast path
        row = lane >> (width.bit_length() - 1)
        col = lane & (width - 1)
    else:
        row = lane // width
        col = lane - row * width

    # Per-tap (weight column, static flat shift, border-validity mask).  The
    # masks zero the circularly-wrapped contributions, reproducing "same"
    # zero padding.  Shared by both depthwise convs and all sublane rows.
    taps = []
    for oh in (-1, 0, 1):
        for ow in (-1, 0, 1):
            if oh == 0 and ow == 0:
                continue
            t = (oh + 1) * 3 + (ow + 1)              # weight column index
            shift = (-(oh * width + ow)) % hw        # shifted[i] = v[i + oh*W + ow]
            conds = []
            if oh < 0:
                conds.append(row >= -oh)
            if oh > 0:
                conds.append(row < height - oh)
            if ow < 0:
                conds.append(col >= -ow)
            if ow > 0:
                conds.append(col < width - ow)
            valid = conds[0]
            for cond in conds[1:]:
                valid = jnp.logical_and(valid, cond)
            taps.append((t, shift, valid))

    def dwconv(v, w_ref, b_ref):
        acc = v * w_ref[:, 4:5]                      # centre tap: no shift/mask
        for t, shift, valid in taps:
            shifted = pltpu.roll(v, shift, axis=1)   # static lane rotate (XLU)
            acc = acc + jnp.where(valid, shifted, 0.0) * w_ref[:, t:t + 1]
        return acc + b_ref[...]

    # depthwise conv 1 + PReLU (single shared slope)
    h = dwconv(x, w1_ref, b1_ref)
    alpha = alpha_ref[0, 0]
    act = jnp.where(h >= 0, h, alpha * h)

    # depthwise conv 2 -> sigmoid gate -> gate * original input.
    # exp lands on the EUP; approx=True would also push the reciprocal there
    # (production knob) -- approx=False keeps exact f32 parity for the test.
    z = dwconv(act, w2_ref, b2_ref)
    g = pl.reciprocal(1.0 + jnp.exp(-z), approx=False)
    out_ref[0] = g * x


def _fold_factor(n, c):
    """Smallest G dividing the batch such that G*C fills the 8 f32 sublanes.

    Smallest (rather than largest) keeps the grid as long as possible so the
    outer "parallel" axis can still be split across v7x's two TensorCores.
    Falls back to G=1 (block dim == full array dim is still legal).
    """
    for g in range(1, n + 1):
        if n % g == 0 and (g * c) % 8 == 0:
            return g
    return 1


def lightsaatt_forward(x_nchw, w1, b1, alpha, w2, b2):
    """x_nchw: (N, C, H, W); w1, w2: (C, 1, 3, 3); b1, b2: (C,); alpha: (1,)."""
    N, C, H, W = x_nchw.shape
    HW = H * W
    G = _fold_factor(N, C)
    NB, CB = N // G, G * C

    # Free contiguous reshape: sample n, channel c -> block n//G, row (n%G)*C+c.
    xf = x_nchw.reshape(NB, CB, HW).astype(jnp.float32)

    # Tile the depthwise parameters to match the folded sublane rows.
    w1r = jnp.tile(w1.reshape(C, 9).astype(jnp.float32), (G, 1))
    w2r = jnp.tile(w2.reshape(C, 9).astype(jnp.float32), (G, 1))
    b1r = jnp.tile(b1.reshape(C, 1).astype(jnp.float32), (G, 1))
    b2r = jnp.tile(b2.reshape(C, 1).astype(jnp.float32), (G, 1))
    alphar = alpha.reshape(1, 1).astype(jnp.float32)

    out_flat = pl.pallas_call(
        functools.partial(_lightsaatt_kernel, height=H, width=W),
        out_shape=jax.ShapeDtypeStruct((NB, CB, HW), jnp.float32),
        grid=(NB,),
        in_specs=[
            pl.BlockSpec((1, CB, HW), lambda n: (n, 0, 0)),
            pl.BlockSpec((CB, 9), lambda n: (0, 0)),
            pl.BlockSpec((CB, 1), lambda n: (0, 0)),
            pl.BlockSpec((CB, 9), lambda n: (0, 0)),
            pl.BlockSpec((CB, 1), lambda n: (0, 0)),
            pl.BlockSpec(memory_space=pltpu.MemorySpace.SMEM),   # alpha scalar
        ],
        out_specs=pl.BlockSpec((1, CB, HW), lambda n: (n, 0, 0)),
        compiler_params=pltpu.CompilerParams(
            dimension_semantics=("parallel",)),
    )(xf, w1r, b1r, w2r, b2r, alphar)

    return out_flat.reshape(N, C, H, W)


def lightsaatt_reference(x, w1, b1, alpha, w2, b2):
    """Pure-JAX NCHW reference matching the PyTorch module semantics."""
    def dwconv(inp, w, b):
        y = jax.lax.conv_general_dilated(
            inp, w, window_strides=(1, 1), padding=((1, 1), (1, 1)),
            dimension_numbers=("NCHW", "OIHW", "NCHW"),
            feature_group_count=inp.shape[1],
            precision=jax.lax.Precision.HIGHEST)
        return y + b[None, :, None, None]

    h = dwconv(x, w1, b1)
    h = jnp.where(h >= 0, h, alpha[0] * h)          # PReLU, single param
    g = jax.nn.sigmoid(dwconv(h, w2, b2))
    return g * x


if __name__ == "__main__":
    # batch=4 -> after folding G=2 samples/block the grid is (2,): sublanes are
    # full AND both v7x TensorCores get a block.
    N, C, H, W = 4, 4, 16, 16

    key = jax.random.PRNGKey(0)
    k1, k2, k3, k4, k5 = jax.random.split(key, 5)
    # deterministic synthetic parameters (shapes from nn.Conv2d(C, C, 3, groups=C))
    w1 = jax.random.normal(k1, (C, 1, 3, 3), jnp.float32) * 0.2
    b1 = jax.random.normal(k2, (C,), jnp.float32) * 0.1
    w2 = jax.random.normal(k3, (C, 1, 3, 3), jnp.float32) * 0.2
    b2 = jax.random.normal(k4, (C,), jnp.float32) * 0.1
    alpha = jnp.array([0.05], jnp.float32)          # nn.PReLU(init=0.05)

    x = jax.random.normal(k5, (N, C, H, W), jnp.float32)

    out = jax.block_until_ready(lightsaatt_forward(x, w1, b1, alpha, w2, b2))
    ref = jax.block_until_ready(lightsaatt_reference(x, w1, b1, alpha, w2, b2))

    assert out.shape == ref.shape == (N, C, H, W)
    assert jnp.allclose(out, ref, atol=1e-5, rtol=1e-5), \
        f"max abs err = {jnp.max(jnp.abs(out - ref))}"

    print("KERNEL_OK")
</pallas_src>

<mosaic_0001>
module attributes {stable_mosaic.version = 11 : i64} {
  func.func @_lightsaatt_kernel(%arg0: i32, %arg1: memref<1x8x256xf32, #tpu.memory_space<vmem>>, %arg2: memref<8x9xf32, #tpu.memory_space<vmem>>, %arg3: memref<8x1xf32, #tpu.memory_space<vmem>>, %arg4: memref<8x9xf32, #tpu.memory_space<vmem>>, %arg5: memref<8x1xf32, #tpu.memory_space<vmem>>, %arg6: memref<1x1xf32, #tpu.memory_space<smem>>, %arg7: memref<1x8x256xf32, #tpu.memory_space<vmem>>) attributes {dimension_semantics = [#tpu.dimension_semantics<parallel>], iteration_bounds = array<i64: 2>, scalar_prefetch = 0 : i64, scratch_operands = 0 : i64, tpu.core_type = #tpu.core_type<tc>, window_params = [{transform_indices = @transform_0, window_bounds = array<i64: 1, 8, 256>}, {pipeline_mode = #tpu.pipeline_mode<synchronous>, transform_indices = @transform_1, window_bounds = array<i64: 8, 9>}, {pipeline_mode = #tpu.pipeline_mode<synchronous>, transform_indices = @transform_2, window_bounds = array<i64: 8, 1>}, {pipeline_mode = #tpu.pipeline_mode<synchronous>, transform_indices = @transform_3, window_bounds = array<i64: 8, 9>}, {pipeline_mode = #tpu.pipeline_mode<synchronous>, transform_indices = @transform_4, window_bounds = array<i64: 8, 1>}, {transform_indices = @transform_5, window_bounds = array<i64: 1, 1>}, {transform_indices = @transform_6, window_bounds = array<i64: 1, 8, 256>}]} {
    %c0 = arith.constant 0 : index
    %c0_0 = arith.constant 0 : index
    %c0_1 = arith.constant 0 : index
    %0 = vector.load %arg1[%c0, %c0_0, %c0_1] : memref<1x8x256xf32, #tpu.memory_space<vmem>>, vector<1x8x256xf32>
    %1 = vector.shape_cast %0 : vector<1x8x256xf32> to vector<8x256xf32>
    %2 = tpu.iota {dimensions = array<i32: 1>} : vector<8x256xi32>
    %c4_i32 = arith.constant 4 : i32
    %3 = vector.broadcast %c4_i32 : i32 to vector<8x256xi32>
    %4 = arith.shrsi %2, %3 : vector<8x256xi32>
    %c15_i32 = arith.constant 15 : i32
    %5 = vector.broadcast %c15_i32 : i32 to vector<8x256xi32>
    %6 = arith.andi %2, %5 : vector<8x256xi32>
    %c1_i32 = arith.constant 1 : i32
    %7 = vector.broadcast %c1_i32 : i32 to vector<8x256xi32>
    %8 = arith.cmpi sge, %4, %7 : vector<8x256xi32>
    %c1_i32_2 = arith.constant 1 : i32
    %9 = vector.broadcast %c1_i32_2 : i32 to vector<8x256xi32>
    %10 = arith.cmpi sge, %6, %9 : vector<8x256xi32>
    %11 = arith.andi %8, %10 : vector<8x256xi1>
    %c1_i32_3 = arith.constant 1 : i32
    %12 = vector.broadcast %c1_i32_3 : i32 to vector<8x256xi32>
    %13 = arith.cmpi sge, %4, %12 : vector<8x256xi32>
    %c1_i32_4 = arith.constant 1 : i32
    %14 = vector.broadcast %c1_i32_4 : i32 to vector<8x256xi32>
    %15 = arith.cmpi sge, %4, %14 : vector<8x256xi32>
    %c15_i32_5 = arith.constant 15 : i32
    %16 = vector.broadcast %c15_i32_5 : i32 to vector<8x256xi32>
    %17 = arith.cmpi slt, %6, %16 : vector<8x256xi32>
    %18 = arith.andi %15, %17 : vector<8x256xi1>
    %c1_i32_6 = arith.constant 1 : i32
    %19 = vector.broadcast %c1_i32_6 : i32 to vector<8x256xi32>
    %20 = arith.cmpi sge, %6, %19 : vector<8x256xi32>
    %c15_i32_7 = arith.constant 15 : i32
    %21 = vector.broadcast %c15_i32_7 : i32 to vector<8x256xi32>
    %22 = arith.cmpi slt, %6, %21 : vector<8x256xi32>
    %c15_i32_8 = arith.constant 15 : i32
    %23 = vector.broadcast %c15_i32_8 : i32 to vector<8x256xi32>
    %24 = arith.cmpi slt, %4, %23 : vector<8x256xi32>
    %c1_i32_9 = arith.constant 1 : i32
    %25 = vector.broadcast %c1_i32_9 : i32 to vector<8x256xi32>
    %26 = arith.cmpi sge, %6, %25 : vector<8x256xi32>
    %27 = arith.andi %24, %26 : vector<8x256xi1>
    %c15_i32_10 = arith.constant 15 : i32
    %28 = vector.broadcast %c15_i32_10 : i32 to vector<8x256xi32>
    %29 = arith.cmpi slt, %4, %28 : vector<8x256xi32>
    %c15_i32_11 = arith.constant 15 : i32
    %30 = vector.broadcast %c15_i32_11 : i32 to vector<8x256xi32>
    %31 = arith.cmpi slt, %4, %30 : vector<8x256xi32>
    %c15_i32_12 = arith.constant 15 : i32
    %32 = vector.broadcast %c15_i32_12 : i32 to vector<8x256xi32>
    %33 = arith.cmpi slt, %6, %32 : vector<8x256xi32>
    %34 = arith.andi %31, %33 : vector<8x256xi1>
    %c0_13 = arith.constant 0 : index
    %c4 = arith.constant 4 : index
    %35 = vector.load %arg2[%c0_13, %c4] : memref<8x9xf32, #tpu.memory_space<vmem>>, vector<8x1xf32>
    %36 = vector.broadcast %35 : vector<8x1xf32> to vector<8x256xf32>
    %37 = arith.mulf %1, %36 : vector<8x256xf32>
    %c17_i32 = arith.constant 17 : i32
    %38 = tpu.dynamic_rotate %1 by %c17_i32 dim 1 : vector<8x256xf32>, i32 -> vector<8x256xf32>
    %cst = arith.constant 0.000000e+00 : f32
    %39 = vector.broadcast %cst : f32 to vector<8x256xf32>
    %40 = arith.select %11, %38, %39 : vector<8x256xi1>, vector<8x256xf32>
    %c0_14 = arith.constant 0 : index
    %c0_15 = arith.constant 0 : index
    %41 = vector.load %arg2[%c0_14, %c0_15] : memref<8x9xf32, #tpu.memory_space<vmem>>, vector<8x1xf32>
    %42 = vector.broadcast %41 : vector<8x1xf32> to vector<8x256xf32>
    %43 = arith.mulf %40, %42 : vector<8x256xf32>
    %44 = arith.addf %37, %43 : vector<8x256xf32>
    %c16_i32 = arith.constant 16 : i32
    %45 = tpu.dynamic_rotate %1 by %c16_i32 dim 1 : vector<8x256xf32>, i32 -> vector<8x256xf32>
    %cst_16 = arith.constant 0.000000e+00 : f32
    %46 = vector.broadcast %cst_16 : f32 to vector<8x256xf32>
    %47 = arith.select %13, %45, %46 : vector<8x256xi1>, vector<8x256xf32>
    %c0_17 = arith.constant 0 : index
    %c1 = arith.constant 1 : index
    %48 = vector.load %arg2[%c0_17, %c1] : memref<8x9xf32, #tpu.memory_space<vmem>>, vector<8x1xf32>
    %49 = vector.broadcast %48 : vector<8x1xf32> to vector<8x256xf32>
    %50 = arith.mulf %47, %49 : vector<8x256xf32>
    %51 = arith.addf %44, %50 : vector<8x256xf32>
    %c15_i32_18 = arith.constant 15 : i32
    %52 = tpu.dynamic_rotate %1 by %c15_i32_18 dim 1 : vector<8x256xf32>, i32 -> vector<8x256xf32>
    %cst_19 = arith.constant 0.000000e+00 : f32
    %53 = vector.broadcast %cst_19 : f32 to vector<8x256xf32>
    %54 = arith.select %18, %52, %53 : vector<8x256xi1>, vector<8x256xf32>
    %c0_20 = arith.constant 0 : index
    %c2 = arith.constant 2 : index
    %55 = vector.load %arg2[%c0_20, %c2] : memref<8x9xf32, #tpu.memory_space<vmem>>, vector<8x1xf32>
    %56 = vector.broadcast %55 : vector<8x1xf32> to vector<8x256xf32>
    %57 = arith.mulf %54, %56 : vector<8x256xf32>
    %58 = arith.addf %51, %57 : vector<8x256xf32>
    %c1_i32_21 = arith.constant 1 : i32
    %59 = tpu.dynamic_rotate %1 by %c1_i32_21 dim 1 : vector<8x256xf32>, i32 -> vector<8x256xf32>
    %cst_22 = arith.constant 0.000000e+00 : f32
    %60 = vector.broadcast %cst_22 : f32 to vector<8x256xf32>
    %61 = arith.select %20, %59, %60 : vector<8x256xi1>, vector<8x256xf32>
    %c0_23 = arith.constant 0 : index
    %c3 = arith.constant 3 : index
    %62 = vector.load %arg2[%c0_23, %c3] : memref<8x9xf32, #tpu.memory_space<vmem>>, vector<8x1xf32>
    %63 = vector.broadcast %62 : vector<8x1xf32> to vector<8x256xf32>
    %64 = arith.mulf %61, %63 : vector<8x256xf32>
    %65 = arith.addf %58, %64 : vector<8x256xf32>
    %c255_i32 = arith.constant 255 : i32
    %66 = tpu.dynamic_rotate %1 by %c255_i32 dim 1 : vector<8x256xf32>, i32 -> vector<8x256xf32>
    %cst_24 = arith.constant 0.000000e+00 : f32
    %67 = vector.broadcast %cst_24 : f32 to vector<8x256xf32>
    %68 = arith.select %22, %66, %67 : vector<8x256xi1>, vector<8x256xf32>
    %c0_25 = arith.constant 0 : index
    %c5 = arith.constant 5 : index
    %69 = vector.load %arg2[%c0_25, %c5] : memref<8x9xf32, #tpu.memory_space<vmem>>, vector<8x1xf32>
    %70 = vector.broadcast %69 : vector<8x1xf32> to vector<8x256xf32>
    %71 = arith.mulf %68, %70 : vector<8x256xf32>
    %72 = arith.addf %65, %71 : vector<8x256xf32>
    %c241_i32 = arith.constant 241 : i32
    %73 = tpu.dynamic_rotate %1 by %c241_i32 dim 1 : vector<8x256xf32>, i32 -> vector<8x256xf32>
    %cst_26 = arith.constant 0.000000e+00 : f32
    %74 = vector.broadcast %cst_26 : f32 to vector<8x256xf32>
    %75 = arith.select %27, %73, %74 : vector<8x256xi1>, vector<8x256xf32>
    %c0_27 = arith.constant 0 : index
    %c6 = arith.constant 6 : index
    %76 = vector.load %arg2[%c0_27, %c6] : memref<8x9xf32, #tpu.memory_space<vmem>>, vector<8x1xf32>
    %77 = vector.broadcast %76 : vector<8x1xf32> to vector<8x256xf32>
    %78 = arith.mulf %75, %77 : vector<8x256xf32>
    %79 = arith.addf %72, %78 : vector<8x256xf32>
    %c240_i32 = arith.constant 240 : i32
    %80 = tpu.dynamic_rotate %1 by %c240_i32 dim 1 : vector<8x256xf32>, i32 -> vector<8x256xf32>
    %cst_28 = arith.constant 0.000000e+00 : f32
    %81 = vector.broadcast %cst_28 : f32 to vector<8x256xf32>
    %82 = arith.select %29, %80, %81 : vector<8x256xi1>, vector<8x256xf32>
    %c0_29 = arith.constant 0 : index
    %c7 = arith.constant 7 : index
    %83 = vector.load %arg2[%c0_29, %c7] : memref<8x9xf32, #tpu.memory_space<vmem>>, vector<8x1xf32>
    %84 = vector.broadcast %83 : vector<8x1xf32> to vector<8x256xf32>
    %85 = arith.mulf %82, %84 : vector<8x256xf32>
    %86 = arith.addf %79, %85 : vector<8x256xf32>
    %c239_i32 = arith.constant 239 : i32
    %87 = tpu.dynamic_rotate %1 by %c239_i32 dim 1 : vector<8x256xf32>, i32 -> vector<8x256xf32>
    %cst_30 = arith.constant 0.000000e+00 : f32
    %88 = vector.broadcast %cst_30 : f32 to vector<8x256xf32>
    %89 = arith.select %34, %87, %88 : vector<8x256xi1>, vector<8x256xf32>
    %c0_31 = arith.constant 0 : index
    %c8 = arith.constant 8 : index
    %90 = vector.load %arg2[%c0_31, %c8] : memref<8x9xf32, #tpu.memory_space<vmem>>, vector<8x1xf32>
    %91 = vector.broadcast %90 : vector<8x1xf32> to vector<8x256xf32>
    %92 = arith.mulf %89, %91 : vector<8x256xf32>
    %93 = arith.addf %86, %92 : vector<8x256xf32>
    %c0_32 = arith.constant 0 : index
    %c0_33 = arith.constant 0 : index
    %94 = vector.load %arg3[%c0_32, %c0_33] : memref<8x1xf32, #tpu.memory_space<vmem>>, vector<8x1xf32>
    %95 = vector.broadcast %94 : vector<8x1xf32> to vector<8x256xf32>
    %96 = arith.addf %93, %95 : vector<8x256xf32>
    %c0_34 = arith.constant 0 : index
    %c0_35 = arith.constant 0 : index
    %97 = memref.load %arg6[%c0_34, %c0_35] : memref<1x1xf32, #tpu.memory_space<smem>>
    %cst_36 = arith.constant 0.000000e+00 : f32
    %98 = vector.broadcast %cst_36 : f32 to vector<8x256xf32>
    %99 = arith.cmpf oge, %96, %98 : vector<8x256xf32>
    %100 = vector.broadcast %97 : f32 to vector<8x256xf32>
    %101 = arith.mulf %100, %96 : vector<8x256xf32>
    %102 = arith.select %99, %96, %101 : vector<8x256xi1>, vector<8x256xf32>
    %c0_37 = arith.constant 0 : index
    %c4_38 = arith.constant 4 : index
    %103 = vector.load %arg4[%c0_37, %c4_38] : memref<8x9xf32, #tpu.memory_space<vmem>>, vector<8x1xf32>
    %104 = vector.broadcast %103 : vector<8x1xf32> to vector<8x256xf32>
    %105 = arith.mulf %102, %104 : vector<8x256xf32>
    %c17_i32_39 = arith.constant 17 : i32
    %106 = tpu.dynamic_rotate %102 by %c17_i32_39 dim 1 : vector<8x256xf32>, i32 -> vector<8x256xf32>
    %cst_40 = arith.constant 0.000000e+00 : f32
    %107 = vector.broadcast %cst_40 : f32 to vector<8x256xf32>
    %108 = arith.select %11, %106, %107 : vector<8x256xi1>, vector<8x256xf32>
    %c0_41 = arith.constant 0 : index
    %c0_42 = arith.constant 0 : index
    %109 = vector.load %arg4[%c0_41, %c0_42] : memref<8x9xf32, #tpu.memory_space<vmem>>, vector<8x1xf32>
    %110 = vector.broadcast %109 : vector<8x1xf32> to vector<8x256xf32>
    %111 = arith.mulf %108, %110 : vector<8x256xf32>
    %112 = arith.addf %105, %111 : vector<8x256xf32>
    %c16_i32_43 = arith.constant 16 : i32
    %113 = tpu.dynamic_rotate %102 by %c16_i32_43 dim 1 : vector<8x256xf32>, i32 -> vector<8x256xf32>
    %cst_44 = arith.constant 0.000000e+00 : f32
    %114 = vector.broadcast %cst_44 : f32 to vector<8x256xf32>
    %115 = arith.select %13, %113, %114 : vector<8x256xi1>, vector<8x256xf32>
    %c0_45 = arith.constant 0 : index
    %c1_46 = arith.constant 1 : index
    %116 = vector.load %arg4[%c0_45, %c1_46] : memref<8x9xf32, #tpu.memory_space<vmem>>, vector<8x1xf32>
    %117 = vector.broadcast %116 : vector<8x1xf32> to vector<8x256xf32>
    %118 = arith.mulf %115, %117 : vector<8x256xf32>
    %119 = arith.addf %112, %118 : vector<8x256xf32>
    %c15_i32_47 = arith.constant 15 : i32
    %120 = tpu.dynamic_rotate %102 by %c15_i32_47 dim 1 : vector<8x256xf32>, i32 -> vector<8x256xf32>
    %cst_48 = arith.constant 0.000000e+00 : f32
    %121 = vector.broadcast %cst_48 : f32 to vector<8x256xf32>
    %122 = arith.select %18, %120, %121 : vector<8x256xi1>, vector<8x256xf32>
    %c0_49 = arith.constant 0 : index
    %c2_50 = arith.constant 2 : index
    %123 = vector.load %arg4[%c0_49, %c2_50] : memref<8x9xf32, #tpu.memory_space<vmem>>, vector<8x1xf32>
    %124 = vector.broadcast %123 : vector<8x1xf32> to vector<8x256xf32>
    %125 = arith.mulf %122, %124 : vector<8x256xf32>
    %126 = arith.addf %119, %125 : vector<8x256xf32>
    %c1_i32_51 = arith.constant 1 : i32
    %127 = tpu.dynamic_rotate %102 by %c1_i32_51 dim 1 : vector<8x256xf32>, i32 -> vector<8x256xf32>
    %cst_52 = arith.constant 0.000000e+00 : f32
    %128 = vector.broadcast %cst_52 : f32 to vector<8x256xf32>
    %129 = arith.select %20, %127, %128 : vector<8x256xi1>, vector<8x256xf32>
    %c0_53 = arith.constant 0 : index
    %c3_54 = arith.constant 3 : index
    %130 = vector.load %arg4[%c0_53, %c3_54] : memref<8x9xf32, #tpu.memory_space<vmem>>, vector<8x1xf32>
    %131 = vector.broadcast %130 : vector<8x1xf32> to vector<8x256xf32>
    %132 = arith.mulf %129, %131 : vector<8x256xf32>
    %133 = arith.addf %126, %132 : vector<8x256xf32>
    %c255_i32_55 = arith.constant 255 : i32
    %134 = tpu.dynamic_rotate %102 by %c255_i32_55 dim 1 : vector<8x256xf32>, i32 -> vector<8x256xf32>
    %cst_56 = arith.constant 0.000000e+00 : f32
    %135 = vector.broadcast %cst_56 : f32 to vector<8x256xf32>
    %136 = arith.select %22, %134, %135 : vector<8x256xi1>, vector<8x256xf32>
    %c0_57 = arith.constant 0 : index
    %c5_58 = arith.constant 5 : index
    %137 = vector.load %arg4[%c0_57, %c5_58] : memref<8x9xf32, #tpu.memory_space<vmem>>, vector<8x1xf32>
    %138 = vector.broadcast %137 : vector<8x1xf32> to vector<8x256xf32>
    %139 = arith.mulf %136, %138 : vector<8x256xf32>
    %140 = arith.addf %133, %139 : vector<8x256xf32>
    %c241_i32_59 = arith.constant 241 : i32
    %141 = tpu.dynamic_rotate %102 by %c241_i32_59 dim 1 : vector<8x256xf32>, i32 -> vector<8x256xf32>
    %cst_60 = arith.constant 0.000000e+00 : f32
    %142 = vector.broadcast %cst_60 : f32 to vector<8x256xf32>
    %143 = arith.select %27, %141, %142 : vector<8x256xi1>, vector<8x256xf32>
    %c0_61 = arith.constant 0 : index
    %c6_62 = arith.constant 6 : index
    %144 = vector.load %arg4[%c0_61, %c6_62] : memref<8x9xf32, #tpu.memory_space<vmem>>, vector<8x1xf32>
    %145 = vector.broadcast %144 : vector<8x1xf32> to vector<8x256xf32>
    %146 = arith.mulf %143, %145 : vector<8x256xf32>
    %147 = arith.addf %140, %146 : vector<8x256xf32>
    %c240_i32_63 = arith.constant 240 : i32
    %148 = tpu.dynamic_rotate %102 by %c240_i32_63 dim 1 : vector<8x256xf32>, i32 -> vector<8x256xf32>
    %cst_64 = arith.constant 0.000000e+00 : f32
    %149 = vector.broadcast %cst_64 : f32 to vector<8x256xf32>
    %150 = arith.select %29, %148, %149 : vector<8x256xi1>, vector<8x256xf32>
    %c0_65 = arith.constant 0 : index
    %c7_66 = arith.constant 7 : index
    %151 = vector.load %arg4[%c0_65, %c7_66] : memref<8x9xf32, #tpu.memory_space<vmem>>, vector<8x1xf32>
    %152 = vector.broadcast %151 : vector<8x1xf32> to vector<8x256xf32>
    %153 = arith.mulf %150, %152 : vector<8x256xf32>
    %154 = arith.addf %147, %153 : vector<8x256xf32>
    %c239_i32_67 = arith.constant 239 : i32
    %155 = tpu.dynamic_rotate %102 by %c239_i32_67 dim 1 : vector<8x256xf32>, i32 -> vector<8x256xf32>
    %cst_68 = arith.constant 0.000000e+00 : f32
    %156 = vector.broadcast %cst_68 : f32 to vector<8x256xf32>
    %157 = arith.select %34, %155, %156 : vector<8x256xi1>, vector<8x256xf32>
    %c0_69 = arith.constant 0 : index
    %c8_70 = arith.constant 8 : index
    %158 = vector.load %arg4[%c0_69, %c8_70] : memref<8x9xf32, #tpu.memory_space<vmem>>, vector<8x1xf32>
    %159 = vector.broadcast %158 : vector<8x1xf32> to vector<8x256xf32>
    %160 = arith.mulf %157, %159 : vector<8x256xf32>
    %161 = arith.addf %154, %160 : vector<8x256xf32>
    %c0_71 = arith.constant 0 : index
    %c0_72 = arith.constant 0 : index
    %162 = vector.load %arg5[%c0_71, %c0_72] : memref<8x1xf32, #tpu.memory_space<vmem>>, vector<8x1xf32>
    %163 = vector.broadcast %162 : vector<8x1xf32> to vector<8x256xf32>
    %164 = arith.addf %161, %163 : vector<8x256xf32>
    %cst_73 = arith.constant 0.000000e+00 : f32
    %165 = vector.broadcast %cst_73 : f32 to vector<8x256xf32>
    %166 = arith.subf %165, %164 : vector<8x256xf32>
    %167 = math.exp %166 : vector<8x256xf32>
    %cst_74 = arith.constant 1.000000e+00 : f32
    %168 = vector.broadcast %cst_74 : f32 to vector<8x256xf32>
    %169 = arith.addf %168, %167 : vector<8x256xf32>
    %170 = tpu.reciprocal %169 : vector<8x256xf32> -> vector<8x256xf32>
    %171 = arith.mulf %170, %1 : vector<8x256xf32>
    %c0_75 = arith.constant 0 : index
    %c0_76 = arith.constant 0 : index
    %c0_77 = arith.constant 0 : index
    %172 = vector.load %arg7[%c0_75, %c0_76, %c0_77] : memref<1x8x256xf32, #tpu.memory_space<vmem>>, vector<1x8x256xf32>
    %173 = vector.shape_cast %172 : vector<1x8x256xf32> to vector<8x256xf32>
    %174 = vector.shape_cast %171 : vector<8x256xf32> to vector<1x8x256xf32>
    tpu.vector_store %arg7[%c0_75, %c0_76, %c0_77], %174 {strides = array<i32>} : memref<1x8x256xf32, #tpu.memory_space<vmem>>, vector<1x8x256xf32>,
    return
  }
  func.func @transform_0(%arg0: i32) -> (i32, i32, i32) {
    %c0_i32 = arith.constant 0 : i32
    %c0_i32_0 = arith.constant 0 : i32
    %c0_i32_1 = arith.constant 0 : i32
    return %arg0, %c0_i32, %c0_i32_0 : i32, i32, i32
  }
  func.func @transform_1(%arg0: i32) -> (i32, i32) {
    %c0_i32 = arith.constant 0 : i32
    %c0_i32_0 = arith.constant 0 : i32
    %c0_i32_1 = arith.constant 0 : i32
    return %c0_i32, %c0_i32_0 : i32, i32
  }
  func.func @transform_2(%arg0: i32) -> (i32, i32) {
    %c0_i32 = arith.constant 0 : i32
    %c0_i32_0 = arith.constant 0 : i32
    %c0_i32_1 = arith.constant 0 : i32
    return %c0_i32, %c0_i32_0 : i32, i32
  }
  func.func @transform_3(%arg0: i32) -> (i32, i32) {
    %c0_i32 = arith.constant 0 : i32
    %c0_i32_0 = arith.constant 0 : i32
    %c0_i32_1 = arith.constant 0 : i32
    return %c0_i32, %c0_i32_0 : i32, i32
  }
  func.func @transform_4(%arg0: i32) -> (i32, i32) {
    %c0_i32 = arith.constant 0 : i32
    %c0_i32_0 = arith.constant 0 : i32
    %c0_i32_1 = arith.constant 0 : i32
    return %c0_i32, %c0_i32_0 : i32, i32
  }
  func.func @transform_5(%arg0: i32) -> (i32, i32) {
    %c0_i32 = arith.constant 0 : i32
    %c0_i32_0 = arith.constant 0 : i32
    %c0_i32_1 = arith.constant 0 : i32
    return %c0_i32, %c0_i32_0 : i32, i32
  }
  func.func @transform_6(%arg0: i32) -> (i32, i32, i32) {
    %c0_i32 = arith.constant 0 : i32
    %c0_i32_0 = arith.constant 0 : i32
    %c0_i32_1 = arith.constant 0 : i32
    return %arg0, %c0_i32, %c0_i32_0 : i32, i32, i32
  }
}

</mosaic_0001>

<bundles_post_ra>
// kernel: tpu_custom_call.1
= control target key start
LH: loop header
LB: loop body
LE: loop exit
PB: predicated region body
PF: predicated region fallthrough
CT: control target
= control target key end

     0   :  { %s1471_s0 = inlined_call_operand.hbm [shape: f32[2,8,256], index: 0, kind: input, shape index: {}]   ;;  %s1472_s1 = inlined_call_operand.vmem [shape: f32[8,9], index: 1, kind: input, shape index: {}]   ;;  %s1473_s2 = inlined_call_operand.vmem [shape: f32[8,1], index: 2, kind: input, shape index: {}]   ;;  %s1474_s3 = inlined_call_operand.vmem [shape: f32[8,9], index: 3, kind: input, shape index: {}]   ;;  %s1475_s4 = inlined_call_operand.vmem [shape: f32[8,1], index: 4, kind: input, shape index: {}]   ;;  %s1476_s5 = inlined_call_operand.<no memory space> [shape: f32[1,1], index: 5, kind: input, shape index: {}]   ;;  %s1477_s6 = inlined_call_operand.hbm [shape: f32[2,8,256], index: 6, kind: output, shape index: {}]  }
   0x1   :  { %11 = sst [smem:[#allocation2]] %s1476_s5 }
   0x2   :  { %12 = vsyncpa [#allocation4], 0 }
   0x3   :  { %14 = vsyncpa [#allocation4 + $0x1], 0 }
   0x4   :  { %15 = vsyncpa [#allocation5], 0 }
   0x5   :  { %17 = vsyncpa [#allocation5 + $0x1], 0  ;;  %s959_s23 = smov 0   ;;  %s961_s24 = smov 0  }
   0x6   :  { %s963_s25 = smov 0   ;;  %s965_s26 = smov 0  }
   0x7 LB: > { %s980_s5 = sadd.s32 4294967295, %s900_s26   ;;  %s697_s27 = sadd.s32 4294967294, %s900_s26   ;;  %s900_s26 = sphi %s965_s26, %s1532_s26   ;;  %s896_s25 = sphi %s963_s25, %s1531_s25   ;;  %s892_s24 = sphi %s961_s24, %s1530_s24   ;;  %s888_s23 = sphi %s959_s23, %s1529_s23  }
   0x8   : > { %s984_s28 = sadd.s32 1, %s900_s26   ;;  %s30_s29 = sadd.s32 1, %s896_s25 }
   0x9   : > { %s27_s30 = ssub.s32 %s900_s26, %s984_s28  ;;  %p37_p0 = scmp.ne.s32.totalorder %s896_s25, %s892_s24 }
   0xa   : > { %p28_p1 = scmp.eq.s32.totalorder %s27_s30, 0  ;;  %p38_p2 = scmp.eq.s32.totalorder %s900_s26, 0 }
   0xb   : > { %p43_p3 = scmp.ne.s32.totalorder %s892_s24, %s888_s23  ;;  %p44_p4 = scmp.eq.s32.totalorder %s980_s5, 0 }
   0xc   : > { %s996_s7 = scalar_select %p28_p1, %s896_s25, %s30_s29  }
   0xd   : > { %p998_p5 = por %p38_p2, %p37_p0  ;;  %p1002_p6 = por %p44_p4, %p43_p3 }
   0xe   : > { %p172_p7 = scmp.eq.s32.totalorder %s980_s5, 1  ;;  %p178_p8 = scmp.eq.s32.totalorder %s697_s27, 1 }
   0xf   : > { %p725_p10 = scmp.lt.s32.totalorder %s900_s26, 2  ;;  %s213_s12 = sand.u32 1, %s896_s25  }
  0x10   : > { %p1009_p11 = por %p172_p7, %p37_p0  ;;  %p1013_p12 = por %p178_p8, %p43_p3 }
  0x11   : > { %s711_s13 = sshll.u32 %s900_s26, 8  ;;  %s700_s14 = sshll.u32 %s213_s12, 4 }
  0x12   : > { %s1491_s10 = scalar_select %p1009_p11, 1, 0 }
  0x13   : > { %s1492_s11 = scalar_select %p1013_p12, 1, 0 }
  0x14   : > { %s1022_s17 = scalar_lea.hbm %s1471_s0, %s711_s13  ;;  %s217_s18 = scalar_lea.vmem [#allocation3], %s700_s14 }
  0x15   : > { %s225_s19 = sshll.u32 %s217_s18, 4  ;;  %p1026_p13 = pnand %p725_p10, %p998_p5  ;;  %s1030_s19 = int_to_ptr.vmem [resolvable:$true] %s225_s19 }
  0x16   : > { %s214_s21 = scalar_lea.sflag [#allocation4], %s213_s12  ;;  %s804_s22 = scalar_lea.hbm %s1022_s17, 256 }
  0x17   : > { %p805_p2 = scmp.ne.s32.totalorder %s1022_s17, %s804_s22  ;;  %p806_p3 = pneg %p1026_p13 }
  0x18   : > { %s809_s30 = scalar_lea.hbm %s1471_s0, 512  ;;  %p810_p5 = scmp.lt.u32.totalorder %s1022_s17, %s1471_s0 }
  0x19   : > { %p807_p4 = pnand %p806_p3, %p805_p2  ;;  %p811_p8 = scmp.lt.u32.totalorder %s809_s30, %s804_s22 }
  0x1a   : > { %p813_p9 = scmp.lt.u32.totalorder %s804_s22, %s1022_s17 }
  0x1b   : > { %p808_p7 = pneg %p807_p4  ;;  %p812_p10 = por %p811_p8, %p810_p5 }
  0x1d   : > { %p814_p0 = por %p813_p9, %p812_p10 }
  0x1f   : > { %p815_p1 = pnand %p814_p0, %p808_p7 }
  0x21   : > { %818 = shalt.err (!%p815_p1)
}
  0x22   : > { %s819_s12 = scalar_lea.vmem %s1030_s19, 256  ;;  %s902_s14 = smov [#allocation3]  }
  0x23   : > { %p820_p2 = scmp.ne.s32.totalorder %s1030_s19, %s819_s12  ;;  %s824_s15 = sshll.u32 %s902_s14, 4  ;;  %s825_s15 = int_to_ptr.vmem [resolvable:$false] %s824_s15 }
  0x24   : > { %s826_s16 = scalar_lea.vmem %s825_s15, 512  ;;  %p827_p11 = scmp.lt.s32.totalorder %s1030_s19, %s825_s15 }
  0x25   : > { %p822_p4 = pnand %p820_p2, %p806_p3  ;;  %p828_p5 = scmp.lt.s32.totalorder %s826_s16, %s819_s12 }
  0x27   : > { %p823_p12 = pneg %p822_p4  ;;  %p829_p8 = por %p828_p5, %p827_p11 }
  0x29   : > { %p830_p9 = pnand %p829_p8, %p823_p12 }
  0x2b   : > { %833 = shalt.err (!%p830_p9)
}
  0x2c   : > { %720 = dma.hbm_to_vmem [thread:$0]  (!%p1026_p13), %s1022_s17, 256, %s1030_s19, %s214_s21  }
  0x2d   : > { %p1494_p0 = scmp.lt.s32.totalorder %s900_s26, 3  ;;  %p1495_p1 = scmp.ge.s32.totalorder %s900_s26, 1 }
  0x2f   : > { %p231_p3 = pnand %p1495_p1, %p1494_p0 }
  0x30   : > { %s1064_s18 = sand.u32 (!%p231_p3), 1, %s892_s24  }
  0x31   : > { %234 = sbr.rel (%p231_p3) target bundleno = 483 (0x1e3), region = 44  ;;  %s704_s22 = sshll.u32 (!%p231_p3), %s1064_s18, 4 }
  0x32   : > { %s237_s27 = scalar_lea.sflag (!%p231_p3), [#allocation4], %s1064_s18  ;;  %s240_s20 = scalar_lea.vmem (!%p231_p3), [#allocation3], %s704_s22 }
  0x38   : > { %879 = dma.done.wait (%p1002_p6), %s237_s27, 256  }
  0x39   : > { %881 = vsyncadd (%p1002_p6), %s237_s27, 4294967040  ;;  %v903_v0 = vmov 1   ;;  %v904_v1 = vmov 4   ;;  %v294_v2 = vld [vmem:[%s1472_s1] sm:$0xff]  ;;  %v905_v3 = vmov 2   ;;  %v906_v4 = vmov 0  }
  0x3a   : > { %778 = vset.pattern.permute.xlu1 %v903_v0  ;;  %776 = vset.pattern.permute.xlu0 %v904_v1  ;;  %v1079_v5 = vld [vmem:[%s240_s20] sm:$0xff]  ;;  %v1081_v6 = vld [vmem:[%s240_s20 + $0x8] sm:$0xff]  ;;  %s907_s9 = smov 17   ;;  %v908_v7 = vmov 3   ;;  %v909_v8 = vmov 5   ;;  %s910_s21 = smov 16   ;;  %v271_v23 = vlaneseq }
  0x3b   : > { %329 = vperm.xlu1 %778, %v294_v2   ;;  %297 = vperm.xlu0 %776, %v294_v2   ;;  %s911_s29 = smov 15   ;;  %v912_v9 = vmov 6   ;;  %v913_v10 = vmov 7   ;;  %s914_s30 = smov 1   ;;  %v915_v11 = vmov 8   ;;  %v438_v12 = vld [vmem:[%s1473_s2] sm:$0xff] }
  0x3c   : > { %s916_s8 = smov 112   ;;  %s917_s13 = smov 127   ;;  %v454_v13 = vld [vmem:[%s1474_s3] sm:$0xff]  ;;  %v1129_v26 = vand.u32 127, %v271_v23 }
  0x3d   : > { %s918_s27 = smov 113   ;;  %s919_s20 = smov 111  }
  0x3e   : > { %v273_v29 = vadd.s32 128, %v1129_v26  ;;  %v274_v30 = vshra.s32 %v1129_v26, 4  ;;  %v276_v31 = vand.u32 15, %v1129_v26  ;;  %vm306_vm4 = vcmp.lt.s32.totalorder %v1129_v26, 17  ;;  %s446_s17 = sld [smem:[#allocation2]]  ;;  %p1526_p11 = scmp.ne.s32.totalorder %s1491_s10, 0 }
  0x3f   : > { %779 = vset.pattern.permute.xlu1 %v905_v3  ;;  %777 = vset.pattern.permute.xlu0 %v906_v4  ;;  %vm323_vm6 = vcmp.lt.s32.totalorder %v1129_v26, 16  ;;  %vm340_vm10 = vcmp.lt.s32.totalorder %v1129_v26, 15  ;;  %vm1481_vm12 = vcmp.lt.s32.totalorder %v1129_v26, 1  ;;  %vm1483_vm13 = vcmp.lt.s32.totalorder %v1129_v26, 127  ;;  %s920_s14 = smov [#allocation6]  }
  0x40   : > { %346 = vperm.xlu1 %779, %v294_v2   ;;  %312 = vperm.xlu0 %777, %v294_v2   ;;  %v275_v33 = vshra.s32 %v273_v29, 4  ;;  %v277_v34 = vand.u32 15, %v273_v29  ;;  %vm1138_vm0 = vcmp.ge.s32.totalorder %v274_v30, 1  ;;  %vm1142_vm1 = vcmp.ge.s32.totalorder %v276_v31, 1  ;;  %s838_s15 = sshll.u32 %s920_s14, 4  ;;  %s839_s15 = int_to_ptr.vmem [resolvable:$false] %s838_s15 }
  0x41   : > { %vm1480_vm5 = vmand %vm1138_vm0, %vm1142_vm1  ;;  %vm1170_vm8 = vcmp.lt.s32.totalorder %v276_v31, 15  ;;  %vm1199_vm14 = vcmp.lt.s32.totalorder %v274_v30, 15  ;;  %s840_s16 = scalar_lea.vmem %s839_s15, 512 }
  0x42   : > { %vm1146_vm2 = vcmp.ge.s32.totalorder %v275_v33, 1  ;;  %vm1150_vm3 = vcmp.ge.s32.totalorder %v277_v34, 1  ;;  %vm1178_vm9 = vcmp.lt.s32.totalorder %v277_v34, 15  ;;  %vm286_vm11 = vmand %vm1138_vm0, %vm1170_vm8 }
  0x43   : > { %vm1479_vm7 = vmand %vm1146_vm2, %vm1150_vm3 }
  0x44   : > { %302 = vrot.lane.b32.xlu1 %v1079_v5, %s907_s9  ;;  %304 = vrot.lane.b32.xlu0 %v1081_v6, %s907_s9  ;;  %vm1482_vm15 = vmand %vm1146_vm2, %vm1178_vm9 }
  0x45   : > { %780 = vset.pattern.permute.xlu1 %v908_v7  ;;  %781 = vset.pattern.permute.xlu0 %v909_v8 }
  0x48   : > { %363 = vperm.xlu1 %780, %v294_v2   ;;  %319 = vrot.lane.b32.xlu0 %v1079_v5, %s910_s21 }
  0x4c   : > { %321 = vrot.lane.b32.xlu1 %v1081_v6, %s910_s21  ;;  %380 = vperm.xlu0 %781, %v294_v2  }
  0x4d   : > { %787 = vset.pattern.permute.xlu1 %v906_v4 }
  0x50   : > { %336 = vrot.lane.b32.xlu1 %v1079_v5, %s911_s29  ;;  %782 = vset.pattern.permute.xlu0 %v912_v9 }
  0x51   : > { %397 = vperm.xlu0 %782, %v294_v2  }
  0x54   : > { %338 = vrot.lane.b32.xlu1 %v1081_v6, %s911_s29 }
  0x55   : > { %783 = vset.pattern.permute.xlu0 %v913_v10 }
  0x56   : > { %414 = vperm.xlu0 %783, %v294_v2  }
  0x58   : > { %353 = vrot.lane.b32.xlu1 %v1079_v5, %s914_s30 }
  0x5a   : > { %784 = vset.pattern.permute.xlu0 %v915_v11 }
  0x5b   : > { %431 = vperm.xlu0 %784, %v294_v2  }
  0x5c   : > { %355 = vrot.lane.b32.xlu1 %v1081_v6, %s914_s30 }
  0x5f   : > { %404 = vrot.lane.b32.xlu0 %v1079_v5, %s916_s8 }
  0x60   : > { %370 = vrot.lane.b32.xlu1 %v1079_v5, %s917_s13  ;;  %785 = vset.pattern.permute.xlu0 %v906_v4 }
  0x63   : > { %441 = vperm.xlu0 %785, %v438_v12  }
  0x64   : > { %372 = vrot.lane.b32.xlu1 %v1081_v6, %s917_s13 }
  0x67   : > { %786 = vset.pattern.permute.xlu0 %v904_v1 }
  0x68   : > { %387 = vrot.lane.b32.xlu1 %v1079_v5, %s918_s27  ;;  %457 = vperm.xlu0 %786, %v454_v13  }
  0x6c   : > { %389 = vrot.lane.b32.xlu1 %v1081_v6, %s918_s27  ;;  %789 = vset.pattern.permute.xlu0 %v905_v3 }
  0x6d   : > { %503 = vperm.xlu0 %789, %v454_v13  }
  0x70   : > { %406 = vrot.lane.b32.xlu1 %v1081_v6, %s916_s8 }
  0x71   : > { %790 = vset.pattern.permute.xlu0 %v908_v7 }
  0x72   : > { %519 = vperm.xlu0 %790, %v454_v13  }
  0x74   : > { %421 = vrot.lane.b32.xlu1 %v1079_v5, %s919_s20 }
  0x76   : > { %791 = vset.pattern.permute.xlu0 %v909_v8 }
  0x77   : > { %535 = vperm.xlu0 %791, %v454_v13  }
  0x78   : > { %423 = vrot.lane.b32.xlu1 %v1081_v6, %s919_s20 }
  0x7b   : > { %792 = vset.pattern.permute.xlu0 %v912_v9 }
  0x7c   : > { %551 = vperm.xlu0 %792, %v454_v13   ;;  %471 = vperm.xlu1 %787, %v454_v13  }
  0x80   : > { %793 = vset.pattern.permute.xlu0 %v913_v10  ;;  %788 = vset.pattern.permute.xlu1 %v903_v0 }
  0x81   : > { %567 = vperm.xlu0 %793, %v454_v13   ;;  %487 = vperm.xlu1 %788, %v454_v13  }
  0x85   : > { %794 = vset.pattern.permute.xlu0 %v915_v11 }
  0x86   : > { %583 = vperm.xlu0 %794, %v454_v13  }
  0x8a   : > { %795 = vset.pattern.permute.xlu0 %v906_v4 }
  0xba   : > { %v330_v14 = vpop.permute.xlu1 %329  ;;  %v298_v16 = vpop.permute.xlu0 %297 }
  0xbb   : > { %v300_v57 = vmul.f32 %v298_v16, %v1079_v5  ;;  %v301_v58 = vmul.f32 %v298_v16, %v1081_v6 }
  0xbf   : > { %v1125_v15 = vpop.permute.xlu1 %346  ;;  %v313_v19 = vpop.permute.xlu0 %312 }
  0xc3   : > { %v303_v17 = vpop.permute.xlu1 %302  ;;  %v305_v21 = vpop.permute.xlu0 %304 }
  0xc4   : > { %v307_v41 = vsel %vm306_vm4, %v303_v17, %v305_v21  ;;  %v308_v42 = vsel %vm306_vm4, %v305_v21, %v303_v17 }
  0xc5   : > { %v309_v49 = vsel %vm1480_vm5, %v308_v42, 0.0  ;;  %v310_v50 = vsel %vm1479_vm7, %v307_v41, 0.0  ;;  %vm1221_vm7 = vcmp.lt.s32.totalorder %v275_v33, 15  ;;  %vm391_vm5 = vcmp.lt.s32.totalorder %v1129_v26, 113 }
  0xc6   : > { %v315_v59 = vmul.f32 %v313_v19, %v309_v49  ;;  %v316_v60 = vmul.f32 %v313_v19, %v310_v50 }
  0xc7   : > { %v1127_v18 = vpop.permute.xlu1 %363  ;;  %v320_v24 = vpop.permute.xlu0 %319 }
  0xc8   : > { %v317_v10 = vadd.f32 %v315_v59, %v300_v57  ;;  %v318_v11 = vadd.f32 %v316_v60, %v301_v58 }
  0xcb   : > { %v322_v20 = vpop.permute.xlu1 %321  ;;  %v1131_v28 = vpop.permute.xlu0 %380 }
  0xcc   : > { %v324_v46 = vsel %vm323_vm6, %v320_v24, %v322_v20  ;;  %v325_v47 = vsel %vm323_vm6, %v322_v20, %v320_v24 }
  0xcd   : > { %v326_v53 = vsel %vm1138_vm0, %v325_v47, 0.0  ;;  %v327_v54 = vsel %vm1146_vm2, %v324_v46, 0.0 }
  0xce   : > { %v332_v1 = vmul.f32 %v330_v14, %v326_v53  ;;  %v333_v2 = vmul.f32 %v330_v14, %v327_v54 }
  0xcf   : > { %v337_v22 = vpop.permute.xlu1 %336 }
  0xd0   : > { %v1136_v35 = vpop.permute.xlu0 %397  ;;  %v334_v20 = vadd.f32 %v332_v1, %v317_v10  ;;  %v335_v21 = vadd.f32 %v333_v2, %v318_v11 }
  0xd3   : > { %v339_v25 = vpop.permute.xlu1 %338 }
  0xd4   : > { %v341_v55 = vsel %vm340_vm10, %v337_v22, %v339_v25  ;;  %v342_v56 = vsel %vm340_vm10, %v339_v25, %v337_v22 }
  0xd5   : > { %v1168_v44 = vpop.permute.xlu0 %414  ;;  %v343_v3 = vsel %vm286_vm11, %v342_v56, 0.0  ;;  %v344_v4 = vsel %vm1482_vm15, %v341_v55, 0.0  ;;  %vm1485_vm15 = vmand %vm1199_vm14, %vm1142_vm1 }
  0xd6   : > { %v349_v14 = vmul.f32 %v1125_v15, %v343_v3  ;;  %v350_v16 = vmul.f32 %v1125_v15, %v344_v4 }
  0xd7   : > { %v354_v27 = vpop.permute.xlu1 %353 }
  0xd8   : > { %v351_v33 = vadd.f32 %v349_v14, %v334_v20 }
  0xda   : > { %v432_v61 = vpop.permute.xlu0 %431 }
  0xdb   : > { %v356_v32 = vpop.permute.xlu1 %355 }
  0xdc   : > { %v358_v62 = vsel %vm1481_vm12, %v354_v27, %v356_v32  ;;  %v359_v63 = vsel %vm1481_vm12, %v356_v32, %v354_v27  ;;  %vm1486_vm12 = vcmp.lt.s32.totalorder %v1129_v26, 112 }
  0xdd   : > { %v360_v12 = vsel %vm1142_vm1, %v359_v63, 0.0  ;;  %v361_v13 = vsel %vm1150_vm3, %v358_v62, 0.0 }
  0xde   : > { %v405_v15 = vpop.permute.xlu0 %404  ;;  %v366_v25 = vmul.f32 %v1127_v18, %v360_v12  ;;  %v367_v27 = vmul.f32 %v1127_v18, %v361_v13  ;;  %v352_v18 = vadd.f32 %v350_v16, %v335_v21 }
  0xdf   : > { %v371_v38 = vpop.permute.xlu1 %370 }
  0xe0   : > { %v368_v46 = vadd.f32 %v366_v25, %v351_v33  ;;  %v369_v47 = vadd.f32 %v367_v27, %v352_v18 }
  0xe2   : > { %v442_v2 = vpop.permute.xlu0 %441 }
  0xe3   : > { %v373_v43 = vpop.permute.xlu1 %372 }
  0xe4   : > { %v375_v8 = vsel %vm1483_vm13, %v371_v38, %v373_v43  ;;  %v376_v9 = vsel %vm1483_vm13, %v373_v43, %v371_v38  ;;  %vm1484_vm13 = vmand %vm1221_vm7, %vm1150_vm3 }
  0xe5   : > { %v377_v22 = vsel %vm1170_vm8, %v375_v8, 0.0  ;;  %v378_v23 = vsel %vm1178_vm9, %v376_v9, 0.0 }
  0xe6   : > { %v383_v34 = vmul.f32 %v1131_v28, %v377_v22  ;;  %v384_v38 = vmul.f32 %v1131_v28, %v378_v23 }
  0xe7   : > { %v388_v51 = vpop.permute.xlu1 %387  ;;  %v458_v20 = vpop.permute.xlu0 %457 }
  0xe8   : > { %v385_v28 = vadd.f32 %v383_v34, %v368_v46 }
  0xeb   : > { %v390_v7 = vpop.permute.xlu1 %389 }
  0xec   : > { %v392_v17 = vsel %vm391_vm5, %v388_v51, %v390_v7  ;;  %v393_v19 = vsel %vm391_vm5, %v390_v7, %v388_v51  ;;  %v386_v51 = vadd.f32 %v384_v38, %v369_v47  ;;  %v449_v7 = vstv %s446_s17  ;;  %v504_v22 = vpop.permute.xlu0 %503 }
  0xed   : > { %v394_v31 = vsel %vm1485_vm15, %v392_v17, 0.0  ;;  %v395_v32 = vsel %vm1484_vm13, %v393_v19, 0.0  ;;  %vm1488_vm13 = vmand %vm1199_vm14, %vm1170_vm8  ;;  %vm1487_vm15 = vcmp.lt.s32.totalorder %v1129_v26, 111 }
  0xee   : > { %v400_v49 = vmul.f32 %v1136_v35, %v394_v31  ;;  %v401_v50 = vmul.f32 %v1136_v35, %v395_v32 }
  0xef   : > { %v407_v24 = vpop.permute.xlu1 %406 }
  0xf0   : > { %v409_v29 = vsel %vm1486_vm12, %v405_v15, %v407_v24  ;;  %v410_v30 = vsel %vm1486_vm12, %v407_v24, %v405_v15  ;;  %vm293_vm12 = vmand %vm1221_vm7, %vm1178_vm9  ;;  %v402_v55 = vadd.f32 %v400_v49, %v385_v28  ;;  %v403_v56 = vadd.f32 %v401_v50, %v386_v51 }
  0xf1   : > { %v411_v41 = vsel %vm1199_vm14, %v409_v29, 0.0  ;;  %v412_v42 = vsel %vm1221_vm7, %v410_v30, 0.0  ;;  %v520_v24 = vpop.permute.xlu0 %519 }
  0xf2   : > { %v417_v53 = vmul.f32 %v1168_v44, %v411_v41  ;;  %v418_v54 = vmul.f32 %v1168_v44, %v412_v42 }
  0xf3   : > { %v422_v43 = vpop.permute.xlu1 %421 }
  0xf4   : > { %v419_v63 = vadd.f32 %v417_v53, %v402_v55  ;;  %v420_v1 = vadd.f32 %v418_v54, %v403_v56 }
  0xf6   : > { %v536_v27 = vpop.permute.xlu0 %535 }
  0xf7   : > { %v424_v35 = vpop.permute.xlu1 %423 }
  0xf8   : > { %v426_v57 = vsel %vm1487_vm15, %v422_v43, %v424_v35  ;;  %v427_v58 = vsel %vm1487_vm15, %v424_v35, %v422_v43 }
  0xf9   : > { %v428_v44 = vsel %vm1488_vm13, %v426_v57, 0.0  ;;  %v429_v59 = vsel %vm293_vm12, %v427_v58, 0.0 }
  0xfa   : > { %v434_v60 = vmul.f32 %v432_v61, %v428_v44  ;;  %v435_v62 = vmul.f32 %v432_v61, %v429_v59  ;;  %v590_v61 = vld [vmem:[%s1475_s4] sm:$0xff] }
  0xfb   : > { %v472_v14 = vpop.permute.xlu1 %471  ;;  %v552_v31 = vpop.permute.xlu0 %551 }
  0xfc   : > { %v436_v3 = vadd.f32 %v434_v60, %v419_v63  ;;  %v437_v4 = vadd.f32 %v435_v62, %v420_v1 }
  0xfe   : > { %v444_v8 = vadd.f32 %v442_v2, %v436_v3  ;;  %v445_v9 = vadd.f32 %v442_v2, %v437_v4 }
 0x100   : > { %vm447_vm15 = vcmp.ge.f32.partialorder %v444_v8, 0.0  ;;  %v450_v10 = vmul.f32 %v449_v7, %v444_v8  ;;  %v451_v11 = vmul.f32 %v449_v7, %v445_v9  ;;  %vm448_vm13 = vcmp.ge.f32.partialorder %v445_v9, 0.0  ;;  %v488_v16 = vpop.permute.xlu1 %487  ;;  %v568_v33 = vpop.permute.xlu0 %567 }
 0x102   : > { %v452_v12 = vsel %vm447_vm15, %v444_v8, %v450_v10  ;;  %v453_v13 = vsel %vm448_vm13, %v445_v9, %v451_v11  ;;  %vm1512_vm13 = vmand %vm1138_vm0, %vm1142_vm1 }
 0x103   : > { %558 = vrot.lane.b32.xlu0 %v452_v12, %s916_s8  ;;  %462 = vrot.lane.b32.xlu1 %v452_v12, %s907_s9  ;;  %vm1513_vm15 = vmand %vm1146_vm2, %vm1150_vm3  ;;  %v460_v55 = vmul.f32 %v458_v20, %v452_v12  ;;  %v461_v56 = vmul.f32 %v458_v20, %v453_v13 }
 0x105   : > { %v584_v53 = vpop.permute.xlu0 %583 }
 0x107   : > { %464 = vrot.lane.b32.xlu1 %v453_v13, %s907_s9  ;;  %593 = vperm.xlu0 %795, %v590_v61   ;;  %s712_s9 = sshll.u32 %s980_s5, 8  ;;  %s613_s5 = scalar_lea.sflag [#allocation5], %s1064_s18 }
 0x10b   : > { %478 = vrot.lane.b32.xlu1 %v452_v12, %s910_s21 }
 0x10f   : > { %480 = vrot.lane.b32.xlu1 %v453_v13, %s910_s21  ;;  %s268_s21 = scalar_lea.vmem [#allocation6], %s704_s22 }
 0x113   : > { %494 = vrot.lane.b32.xlu1 %v452_v12, %s911_s29 }
 0x117   : > { %496 = vrot.lane.b32.xlu1 %v453_v13, %s911_s29  ;;  %s627_s29 = sshll.u32 %s268_s21, 4  ;;  %s1429_s29 = int_to_ptr.vmem [resolvable:$true] %s627_s29 }
 0x118   : > { %s834_s22 = scalar_lea.vmem %s1429_s29, 256  ;;  %p841_p7 = scmp.lt.s32.totalorder %s1429_s29, %s839_s15 }
 0x119   : > { %p835_p6 = scmp.ne.s32.totalorder %s1429_s29, %s834_s22  ;;  %p842_p10 = scmp.lt.s32.totalorder %s840_s16, %s834_s22 }
 0x11b   : > { %510 = vrot.lane.b32.xlu1 %v452_v12, %s914_s30  ;;  %p836_p12 = pnand %p835_p6, %p1526_p11  ;;  %p843_p2 = por %p842_p10, %p841_p7 }
 0x11d   : > { %p837_p13 = pneg %p836_p12 }
 0x11f   : > { %512 = vrot.lane.b32.xlu1 %v453_v13, %s914_s30  ;;  %p844_p4 = pnand %p843_p2, %p837_p13 }
 0x123   : > { %526 = vrot.lane.b32.xlu1 %v452_v12, %s917_s13 }
 0x127   : > { %528 = vrot.lane.b32.xlu1 %v453_v13, %s917_s13  ;;  %s1427_s13 = scalar_lea.hbm %s1477_s6, %s712_s9 }
 0x12b   : > { %542 = vrot.lane.b32.xlu1 %v452_v12, %s918_s27 }
 0x12f   : > { %544 = vrot.lane.b32.xlu1 %v453_v13, %s918_s27 }
 0x133   : > { %560 = vrot.lane.b32.xlu1 %v453_v13, %s916_s8 }
 0x137   : > { %574 = vrot.lane.b32.xlu1 %v452_v12, %s919_s20 }
 0x13b   : > { %576 = vrot.lane.b32.xlu1 %v453_v13, %s919_s20 }
 0x175   : > { %v463_v17 = vpop.permute.xlu1 %462  ;;  %v559_v11 = vpop.permute.xlu0 %558 }
 0x179   : > { %v465_v19 = vpop.permute.xlu1 %464 }
 0x17a   : > { %v466_v18 = vsel %vm306_vm4, %v463_v17, %v465_v19  ;;  %v467_v34 = vsel %vm306_vm4, %v465_v19, %v463_v17  ;;  %vm1514_vm4 = vcmp.lt.s32.totalorder %v1129_v26, 1 }
 0x17b   : > { %v468_v43 = vsel %vm1512_vm13, %v467_v34, 0.0  ;;  %v469_v46 = vsel %vm1513_vm15, %v466_v18, 0.0  ;;  %vm1517_vm13 = vcmp.lt.s32.totalorder %v1129_v26, 127 }
 0x17c   : > { %v474_v54 = vmul.f32 %v472_v14, %v468_v43  ;;  %v475_v35 = vmul.f32 %v472_v14, %v469_v46  ;;  %vm1518_vm15 = vmmov %vm1517_vm13 }
 0x17d   : > { %v479_v21 = vpop.permute.xlu1 %478 }
 0x17e   : > { %v476_v3 = vadd.f32 %v474_v54, %v460_v55  ;;  %v477_v4 = vadd.f32 %v475_v35, %v461_v56 }
 0x181   : > { %v481_v23 = vpop.permute.xlu1 %480 }
 0x182   : > { %v482_v41 = vsel %vm323_vm6, %v479_v21, %v481_v23  ;;  %v483_v42 = vsel %vm323_vm6, %v481_v23, %v479_v21  ;;  %vm1515_vm6 = vmmov %vm1514_vm4 }
 0x183   : > { %v484_v49 = vsel %vm1138_vm0, %v483_v42, 0.0  ;;  %v485_v50 = vsel %vm1146_vm2, %v482_v41, 0.0  ;;  %vm1519_vm0 = vcmp.lt.s32.totalorder %v1129_v26, 112 }
 0x184   : > { %v490_v44 = vmul.f32 %v488_v16, %v484_v49  ;;  %v491_v59 = vmul.f32 %v488_v16, %v485_v50 }
 0x185   : > { %v495_v15 = vpop.permute.xlu1 %494 }
 0x186   : > { %v492_v12 = vadd.f32 %v490_v44, %v476_v3  ;;  %v493_v61 = vadd.f32 %v491_v59, %v477_v4  ;;  %v594_v56 = vpop.permute.xlu0 %593 }
 0x189   : > { %v497_v25 = vpop.permute.xlu1 %496 }
 0x18a   : > { %v498_v28 = vsel %vm340_vm10, %v495_v15, %v497_v25  ;;  %v499_v51 = vsel %vm340_vm10, %v497_v25, %v495_v15  ;;  %vm1516_vm10 = vmand %vm1146_vm2, %vm1178_vm9 }
 0x18b   : > { %v500_v60 = vsel %vm286_vm11, %v499_v51, 0.0  ;;  %v501_v62 = vsel %vm1516_vm10, %v498_v28, 0.0  ;;  %vm1520_vm2 = vmmov %vm1519_vm0 }
 0x18c   : > { %v506_v39 = vmul.f32 %v504_v22, %v500_v60  ;;  %v507_v8 = vmul.f32 %v504_v22, %v501_v62  ;;  %vm1522_vm11 = vmand %vm1221_vm7, %vm1150_vm3 }
 0x18d   : > { %v511_v29 = vpop.permute.xlu1 %510 }
 0x18e   : > { %v508_v15 = vadd.f32 %v506_v39, %v492_v12 }
 0x191   : > { %v513_v30 = vpop.permute.xlu1 %512 }
 0x192   : > { %v514_v57 = vsel %vm1514_vm4, %v511_v29, %v513_v30  ;;  %v515_v58 = vsel %vm1515_vm6, %v513_v30, %v511_v29  ;;  %vm1525_vm4 = vmand %vm1199_vm14, %vm1170_vm8 }
 0x193   : > { %v516_v36 = vsel %vm1142_vm1, %v515_v58, 0.0  ;;  %v517_v7 = vsel %vm1150_vm3, %v514_v57, 0.0 }
 0x194   : > { %v522_v17 = vmul.f32 %v520_v24, %v516_v36  ;;  %v523_v19 = vmul.f32 %v520_v24, %v517_v7  ;;  %v509_v24 = vadd.f32 %v507_v8, %v493_v61 }
 0x195   : > { %v527_v32 = vpop.permute.xlu1 %526 }
 0x196   : > { %v524_v37 = vadd.f32 %v522_v17, %v508_v15  ;;  %v525_v34 = vadd.f32 %v523_v19, %v509_v24 }
 0x199   : > { %v529_v38 = vpop.permute.xlu1 %528 }
 0x19a   : > { %v530_v1 = vsel %vm1517_vm13, %v527_v32, %v529_v38  ;;  %v531_v2 = vsel %vm1518_vm15, %v529_v38, %v527_v32 }
 0x19b   : > { %v532_v13 = vsel %vm1170_vm8, %v530_v1, 0.0  ;;  %v533_v14 = vsel %vm1178_vm9, %v531_v2, 0.0 }
 0x19c   : > { %v538_v25 = vmul.f32 %v536_v27, %v532_v13  ;;  %v539_v29 = vmul.f32 %v536_v27, %v533_v14 }
 0x19d   : > { %v543_v47 = vpop.permute.xlu1 %542 }
 0x19e   : > { %v540_v42 = vadd.f32 %v538_v25, %v524_v37  ;;  %v541_v43 = vadd.f32 %v539_v29, %v525_v34 }
 0x1a1   : > { %v545_v63 = vpop.permute.xlu1 %544 }
 0x1a2   : > { %v546_v9 = vsel %vm391_vm5, %v543_v47, %v545_v63  ;;  %v547_v10 = vsel %vm391_vm5, %v545_v63, %v543_v47  ;;  %vm1521_vm5 = vmand %vm1199_vm14, %vm1142_vm1  ;;  %vm1523_vm1 = vcmp.lt.s32.totalorder %v1129_v26, 111 }
 0x1a3   : > { %v548_v22 = vsel %vm1521_vm5, %v546_v9, 0.0  ;;  %v549_v23 = vsel %vm1522_vm11, %v547_v10, 0.0  ;;  %vm1524_vm3 = vmmov %vm1523_vm1 }
 0x1a4   : > { %v554_v38 = vmul.f32 %v552_v31, %v548_v22  ;;  %v555_v41 = vmul.f32 %v552_v31, %v549_v23 }
 0x1a5   : > { %v561_v16 = vpop.permute.xlu1 %560 }
 0x1a6   : > { %v562_v20 = vsel %vm1519_vm0, %v559_v11, %v561_v16  ;;  %v563_v21 = vsel %vm1520_vm2, %v561_v16, %v559_v11  ;;  %v556_v49 = vadd.f32 %v554_v38, %v540_v42  ;;  %v557_v50 = vadd.f32 %v555_v41, %v541_v43 }
 0x1a7   : > { %v564_v30 = vsel %vm1199_vm14, %v562_v20, 0.0  ;;  %v565_v32 = vsel %vm1221_vm7, %v563_v21, 0.0 }
 0x1a8   : > { %v570_v40 = vmul.f32 %v568_v33, %v564_v30  ;;  %v571_v46 = vmul.f32 %v568_v33, %v565_v32 }
 0x1a9   : > { %v575_v18 = vpop.permute.xlu1 %574 }
 0x1aa   : > { %v572_v35 = vadd.f32 %v570_v40, %v556_v49  ;;  %v573_v55 = vadd.f32 %v571_v46, %v557_v50 }
 0x1ad   : > { %v577_v47 = vpop.permute.xlu1 %576 }
 0x1ae   : > { %v578_v27 = vsel %vm1523_vm1, %v575_v18, %v577_v47  ;;  %v579_v28 = vsel %vm1524_vm3, %v577_v47, %v575_v18 }
 0x1af   : > { %v580_v51 = vsel %vm1525_vm4, %v578_v27, 0.0  ;;  %v581_v31 = vsel %vm293_vm12, %v579_v28, 0.0 }
 0x1b0   : > { %v586_v33 = vmul.f32 %v584_v53, %v580_v51  ;;  %v587_v54 = vmul.f32 %v584_v53, %v581_v31 }
 0x1b2   : > { %v588_v57 = vadd.f32 %v586_v33, %v572_v35  ;;  %v589_v26 = vadd.f32 %v587_v54, %v573_v55 }
 0x1b4   : > { %v596_v52 = vadd.f32 %v594_v56, %v588_v57  ;;  %v597_v58 = vadd.f32 %v594_v56, %v589_v26 }
 0x1b6   : > { %v598_v45 = vsub.f32 0.0, %v596_v52  ;;  %v599_v44 = vsub.f32 0.0, %v597_v58 }
 0x1b8   : > { %v600_v59 = vmul.f32 1.442695, %v598_v45  ;;  %v602_v60 = vmul.f32 1.442695, %v599_v44 }
 0x1ba   : > { %796 = vpow2.f32 %v600_v59 }
 0x1bb   : > { %798 = vpow2.f32 %v602_v60 }
 0x1c4   : > { %v797_v48 = vpop.eup %796 }
 0x1c5   : > { %v799_v0 = vpop.eup %798  ;;  %v604_v62 = vadd.f32 1.0, %v797_v48 }
 0x1c6   : > { %v605_v53 = vadd.f32 1.0, %v799_v0 }
 0x1c7   : > { %800 = vrcp.f32 %v604_v62 }
 0x1c8   : > { %802 = vrcp.f32 %v605_v53 }
 0x1d1   : > { %v801_v63 = vpop.eup %800 }
 0x1d2   : > { %v803_v1 = vpop.eup %802  ;;  %v608_v2 = vmul.f32 %v801_v63, %v1079_v5 }
 0x1d3   : > { %v609_v3 = vmul.f32 %v803_v1, %v1081_v6 }
 0x1d4   : > { %610 = vst [vmem:[%s268_s21] sm:$0xff] %v608_v2 }
 0x1d5   : > { %611 = vst [vmem:[%s268_s21 + $0x8] sm:$0xff] %v609_v3 }
 0x1d6   : > { %847 = shalt.err (!%p844_p4)
}
 0x1d7   : > { %s848_s18 = scalar_lea.hbm %s1427_s13, 256  ;;  %s852_s17 = scalar_lea.hbm %s1477_s6, 512 }
 0x1d8   : > { %p849_p5 = scmp.ne.s32.totalorder %s1427_s13, %s848_s18  ;;  %p853_p0 = scmp.lt.u32.totalorder %s1427_s13, %s1477_s6 }
 0x1d9   : > { %p854_p1 = scmp.lt.u32.totalorder %s852_s17, %s848_s18  ;;  %p856_p6 = scmp.lt.u32.totalorder %s848_s18, %s1427_s13 }
 0x1da   : > { %p850_p8 = pnand %p849_p5, %p1526_p11 }
 0x1db   : > { %p855_p3 = por %p854_p1, %p853_p0 }
 0x1dc   : > { %p851_p9 = pneg %p850_p8 }
 0x1dd   : > { %p857_p12 = por %p856_p6, %p855_p3 }
 0x1df   : > { %p858_p13 = pnand %p857_p12, %p851_p9 }
 0x1e1   : > { %861 = shalt.err (!%p858_p13)
}
 0x1e2   : > { %715 = dma.vmem_to_hbm [thread:$0]  (%p1526_p11), %s1429_s29, 256, %s1427_s13, %s613_s5  }
 0x1e3 PF: > { %s639_s9 = sand.u32 1, %s888_s23   ;;  %p1527_p7 = scmp.ne.s32.totalorder %s1492_s11, 0 }
 0x1e4   : > { %p1528_p10 = scmp.ge.s32.totalorder %s900_s26, 2  ;;  %s640_s21 = scalar_lea.sflag [#allocation5], %s639_s9 }
 0x1e6   : > { %p722_p2 = pnand %p1528_p10, %p1527_p7 }
 0x1e8   : > { %883 = dma.done.wait (!%p722_p2), %s640_s21, 256  }
 0x1e9   : > { %885 = vsyncadd (!%p722_p2), %s640_s21, 4294967040  ;;  %p20_p4 = scmp.ge.s32.totalorder %s984_s28, 4   ;;  %s1529_s23 = smov %s892_s24 }
 0x1ea   : > { %s1530_s24 = smov %s896_s25  ;;  %s1531_s25 = smov %s996_s7 }
 0x1eb   : > { %s1532_s26 = smov %s984_s28  ;;  %22 = sbr.rel (!%p20_p4) target bundleno = 7 (0x7), region = 89 }
 0x1f2   :  { %645 = vsyncpa [#allocation4], 1 }
 0x1f3   :  { %647 = vsyncpa [#allocation4 + $0x1], 1 }
 0x1f4   :  { %648 = vsyncpa [#allocation5], 1 }
 0x1f5   :  { %650 = vsyncpa [#allocation5 + $0x1], 1 }

</bundles_post_ra>
